<compile_context>
chip_gen: v7x
topology: tpu7x:2x2x1
jax: 0.10.0
libtpu: 0.0.40
codegen_flags: <defaults>
</compile_context>

<pallas_src>
from collections import OrderedDict

import jax
import jax.numpy as jnp
import numpy as np
from jax.experimental import pallas as pl
from jax.experimental.pallas import tpu as pltpu


# ----------------------------------------------------------------------------
# Generation-aware VMEM / tile budgets
# ----------------------------------------------------------------------------
_VMEM_CAP = None


def _vmem_capacity_bytes():
    global _VMEM_CAP
    if _VMEM_CAP is None:
        cap = None
        try:
            cap = int(getattr(pltpu.get_tpu_info(), "vmem_capacity_bytes", 0)) or None
        except Exception:
            cap = None
        _VMEM_CAP = cap if cap else 64 * 1024 * 1024     # conservative (v7x)
    return _VMEM_CAP


def _vmem_ceiling_bytes():
    cap = _vmem_capacity_bytes()
    # ~40 MiB on a 64 MiB part, ~96 MiB on 128 MiB parts.
    return max(24 << 20, min(3 * cap // 4, cap - (24 << 20)))


def _tile_budget_bytes():
    # Per-streamed-buffer budget: keep ~4 MiB on 64 MiB VMEM parts, go bigger
    # (fewer grid steps, longer DMAs) when 128 MiB of VMEM is available.
    return (4 << 20) if _vmem_capacity_bytes() <= (80 << 20) else (12 << 20)


def _divisors_desc(n):
    return [d for d in range(n, 0, -1) if n % d == 0]


def _row_tile(h, per_row_stream_bytes, ws_fn):
    """Largest divisor of h whose streamed block fits the per-buffer budget and
    whose total estimated VMEM working set fits under the generation ceiling."""
    cap = max(1, _tile_budget_bytes() // max(1, per_row_stream_bytes))
    ceil = _vmem_ceiling_bytes()
    for d in _divisors_desc(h):
        if d <= cap and ws_fn(d) <= ceil:
            return d
    return 1


def _cparams(semantics, working_bytes):
    ceil = _vmem_ceiling_bytes()
    vmem = int(min(max(int(working_bytes) + (8 << 20), 32 << 20), ceil))
    return pltpu.CompilerParams(dimension_semantics=semantics,
                                vmem_limit_bytes=vmem)


# ----------------------------------------------------------------------------
# Kernel A: 1x1 lateral conv (+ bias) [+ fused nearest-2x top-down add]
# ----------------------------------------------------------------------------
def _lateral_kernel(x_ref, w_ref, b_ref, o_ref):
    # x: (1, th, W, Cin) bf16 ; w: (Cin, C) bf16 ; b: (1, C) f32 ; o: (1, th, W, C) bf16
    _, th, w, cin = x_ref.shape
    c = o_ref.shape[-1]
    x2 = x_ref[...].reshape(th * w, cin)
    y = jnp.dot(x2, w_ref[...], preferred_element_type=jnp.float32) + b_ref[...]
    o_ref[...] = y.astype(o_ref.dtype).reshape(1, th, w, c)


def _lateral_add_kernel(x_ref, w_ref, b_ref, r_ref, o_ref):
    # x: (1, th, 2, W, Cin) bf16  -- two fine rows grouped per coarse row
    # r: (1, th, Wc, C)  bf16    -- coarse top-down feature at half H and half W
    # o: (1, th, 2, W, C) bf16
    _, th, _two, w, cin = x_ref.shape
    c = o_ref.shape[-1]
    wc = r_ref.shape[2]
    x2 = x_ref[...].reshape(th * 2 * w, cin)
    y = jnp.dot(x2, w_ref[...], preferred_element_type=jnp.float32) + b_ref[...]
    y = y.reshape(th, 2, w, c)
    # Nearest-neighbour 2x upsample entirely in-kernel:
    #   W doubling: broadcast + reshape of the (small) coarse tile.
    #   H doubling: broadcast the coarse row over the fine row pair.
    r = r_ref[0].astype(jnp.float32)                                   # (th, Wc, C)
    r = jnp.broadcast_to(r[:, :, None, :], (th, wc, 2, c)).reshape(th, w, c)
    y = y + r[:, None, :, :]
    o_ref[...] = y.astype(o_ref.dtype).reshape(1, th, 2, w, c)


def _lateral_conv(x_nhwc, w1, b1, coarse=None):
    """1x1 conv + bias, optionally fused with the 2x-upsampled top-down add.

    x_nhwc: (N, H, W, Cin) bf16.  coarse: (N, H//2, W//2, C) bf16 or None.
    Returns feat (N, H, W, C) bf16.
    """
    n, h, w, cin = x_nhwc.shape
    c = w1.shape[1]

    if coarse is None:
        def ws(th):
            return (4 * th * w * cin            # x, double-buffered bf16
                    + 4 * th * w * c            # out, double-buffered bf16
                    + 8 * th * w * c            # f32 matmul result + epilogue temp
                    + 4 * cin * c + 16 * c)     # weights / bias (double-buffered)
        th = _row_tile(h, 2 * w * max(cin, c), ws)
        grid = (n, h // th)
        return pl.pallas_call(
            _lateral_kernel,
            grid=grid,
            in_specs=[
                pl.BlockSpec((1, th, w, cin), lambda ni, ri: (ni, ri, 0, 0)),
                pl.BlockSpec((cin, c), lambda ni, ri: (0, 0)),
                pl.BlockSpec((1, c), lambda ni, ri: (0, 0)),
            ],
            out_specs=pl.BlockSpec((1, th, w, c), lambda ni, ri: (ni, ri, 0, 0)),
            out_shape=jax.ShapeDtypeStruct((n, h, w, c), jnp.bfloat16),
            compiler_params=_cparams(("parallel", "parallel"), ws(th)),
        )(x_nhwc, w1, b1)

    hc, wc = coarse.shape[1], coarse.shape[2]
    assert h == 2 * hc and w == 2 * wc, (
        "nn.Upsample(scale_factor=2) semantics require exact 2x level sizes")
    x5 = x_nhwc.reshape(n, hc, 2, w, cin)        # free row-major reshape (no copy)

    def ws(th):
        fr = 2 * th
        return (4 * fr * w * cin                 # x, double-buffered bf16
                + 4 * fr * w * c                 # out, double-buffered bf16
                + 4 * th * wc * c                # coarse, double-buffered bf16
                + 12 * fr * w * c                # f32 result + upsampled coarse + temp
                + 4 * cin * c + 16 * c)
    th = _row_tile(hc, 4 * w * max(cin, c), ws)
    grid = (n, hc // th)
    feat5 = pl.pallas_call(
        _lateral_add_kernel,
        grid=grid,
        in_specs=[
            pl.BlockSpec((1, th, 2, w, cin), lambda ni, ri: (ni, ri, 0, 0, 0)),
            pl.BlockSpec((cin, c), lambda ni, ri: (0, 0)),
            pl.BlockSpec((1, c), lambda ni, ri: (0, 0)),
            pl.BlockSpec((1, th, wc, c), lambda ni, ri: (ni, ri, 0, 0)),
        ],
        out_specs=pl.BlockSpec((1, th, 2, w, c), lambda ni, ri: (ni, ri, 0, 0, 0)),
        out_shape=jax.ShapeDtypeStruct((n, hc, 2, w, c), jnp.bfloat16),
        compiler_params=_cparams(("parallel", "parallel"), ws(th)),
    )(x5, w1, b1, coarse)
    return feat5.reshape(n, h, w, c)


# ----------------------------------------------------------------------------
# Kernel B: 3x3 / pad=1 conv -- row tiles + pre-gathered halo rows,
#            kw taps folded into the matmul K dimension (3 dots, K = 3C)
# ----------------------------------------------------------------------------
def _smooth_kernel(f_ref, t_ref, btm_ref, w3_ref, bias_ref, o_ref):
    # f: (1, tb, W, C) bf16 ; t/btm: (1, 1, W, C) bf16 halo rows (zero at border)
    # w3: (3, 3C, C) bf16 (tap order kh major, kw*C+ci on K) ; bias: (1, C) f32
    _, tb, w, c = f_ref.shape
    stack = jnp.concatenate([t_ref[0], f_ref[0], btm_ref[0]], axis=0)   # (tb+2, W, C)
    zcol = jnp.zeros((tb + 2, 1, c), stack.dtype)
    # Build the three kw-shifted views ONCE per tile and concatenate them along
    # channels -> (tb+2, W, 3C); the 3x3 conv then needs only 3 MXU dots.
    shifted = jnp.concatenate(
        [jnp.concatenate([zcol, stack[:, :w - 1, :]], axis=1),   # kw=0 reads col w-1
         stack,                                                  # kw=1 reads col w
         jnp.concatenate([stack[:, 1:, :], zcol], axis=1)],      # kw=2 reads col w+1
        axis=-1)
    acc = jnp.broadcast_to(bias_ref[...], (tb * w, c)).astype(jnp.float32)
    for kh in range(3):
        acc = acc + jnp.dot(shifted[kh:kh + tb].reshape(tb * w, 3 * c), w3_ref[kh],
                            preferred_element_type=jnp.float32)
    o_ref[...] = acc.astype(o_ref.dtype).reshape(1, tb, w, c)


def _smooth_conv3x3(feat, w3, b3):
    """3x3 conv, padding=1, over a bf16 NHWC feature map -> bf16 NHWC output."""
    n, h, w, c = feat.shape

    def ws(tb):
        blk = tb * w * c
        return (4 * blk                          # feat in, double-buffered bf16
                + 4 * blk                        # out, double-buffered bf16
                + 8 * w * c                      # halo rows, double-buffered bf16
                + 2 * (tb + 2) * w * c           # stacked tile bf16
                + 6 * (tb + 2) * w * c           # kw-concat bf16 (3C wide)
                + 8 * blk                        # f32 accumulator + dot result
                + 12 * c * c + 16 * c)           # weights / bias
    tb = _row_tile(h, 2 * w * c, ws)
    r_tiles = h // tb

    # Halo rows gathered once with cheap XLA strided slices: 2*(R-1) rows per
    # level instead of writing + re-reading a padded copy of the whole map.
    zrow = jnp.zeros((n, 1, w, c), feat.dtype)
    if r_tiles > 1:
        top = jnp.concatenate([zrow, feat[:, tb - 1:h - 1:tb]], axis=1)   # (N, R, W, C)
        bot = jnp.concatenate([feat[:, tb:h:tb], zrow], axis=1)           # (N, R, W, C)
    else:
        top = zrow
        bot = zrow

    grid = (n, r_tiles)
    return pl.pallas_call(
        _smooth_kernel,
        grid=grid,
        in_specs=[
            pl.BlockSpec((1, tb, w, c), lambda ni, ri: (ni, ri, 0, 0)),
            pl.BlockSpec((1, 1, w, c), lambda ni, ri: (ni, ri, 0, 0)),
            pl.BlockSpec((1, 1, w, c), lambda ni, ri: (ni, ri, 0, 0)),
            pl.BlockSpec((3, 3 * c, c), lambda ni, ri: (0, 0, 0)),
            pl.BlockSpec((1, c), lambda ni, ri: (0, 0)),
        ],
        out_specs=pl.BlockSpec((1, tb, w, c), lambda ni, ri: (ni, ri, 0, 0)),
        out_shape=jax.ShapeDtypeStruct((n, h, w, c), jnp.bfloat16),
        compiler_params=_cparams(("parallel", "parallel"), ws(tb)),
    )(feat, top, bot, w3, b3)


# ----------------------------------------------------------------------------
# FPN forward (semantics of the PyTorch module)
# ----------------------------------------------------------------------------
def fpn_forward(x_dict, params, extra_blocks="pool"):
    """x_dict: {i: NCHW array}; returns OrderedDict {0..L-1, 'pool'} of NCHW f32."""
    n_levels = len(x_dict)
    out_layers = [None] * n_levels
    top_down = None

    for i in range(n_levels - 1, -1, -1):
        x_nhwc = jnp.transpose(x_dict[i], (0, 2, 3, 1)).astype(jnp.bfloat16)
        w1, b1 = params["inner"][i]
        feat = _lateral_conv(x_nhwc, w1, b1,
                             coarse=top_down if i != n_levels - 1 else None)
        if i != 0:
            top_down = feat            # the 2x upsample happens inside the next lateral kernel
        w3, b3 = params["layer"][i]
        out_layers[i] = _smooth_conv3x3(feat, w3, b3)

    outputs = OrderedDict()
    for i in range(n_levels):
        # transpose in bf16 (half the traffic), cast to f32 last
        outputs[i] = jnp.transpose(out_layers[i], (0, 3, 1, 2)).astype(jnp.float32)
    if extra_blocks == "pool":
        # F.max_pool2d(x, kernel_size=1, stride=2, padding=0) == stride-2 slice
        outputs["pool"] = outputs[n_levels - 1][:, :, ::2, ::2]
    return outputs


# ----------------------------------------------------------------------------
# Pure-JAX f32 reference (for correctness check)
# ----------------------------------------------------------------------------
def _conv2d_ref(x_nchw, w_oihw, b, padding):
    out = jax.lax.conv_general_dilated(
        x_nchw, w_oihw, (1, 1), [(padding, padding)] * 2,
        dimension_numbers=("NCHW", "OIHW", "NCHW"),
        precision=jax.lax.Precision.HIGHEST,
    )
    return out + b.reshape(1, -1, 1, 1)


def fpn_ref(x_dict, torch_params, extra_blocks="pool"):
    n_levels = len(x_dict)
    out_layers = [None] * n_levels
    top_down = None
    for i in range(n_levels - 1, -1, -1):
        w1, b1 = torch_params["inner"][i]
        feat = _conv2d_ref(x_dict[i], w1, b1, padding=0)
        if i != n_levels - 1:
            feat = feat + top_down
        if i != 0:
            top_down = jnp.repeat(jnp.repeat(feat, 2, axis=2), 2, axis=3)
        w3, b3 = torch_params["layer"][i]
        out_layers[i] = _conv2d_ref(feat, w3, b3, padding=1)
    outputs = OrderedDict()
    for i in range(n_levels):
        outputs[i] = out_layers[i]
    if extra_blocks == "pool":
        outputs["pool"] = out_layers[-1][:, :, ::2, ::2]
    return outputs


# ----------------------------------------------------------------------------
# Deterministic parameter construction (same shapes as the PyTorch module)
# ----------------------------------------------------------------------------
def make_params(key, in_channels, out_channels):
    torch_params = {"inner": [], "layer": []}
    kernel_params = {"inner": [], "layer": []}
    for cin in in_channels:
        key, k1, k2 = jax.random.split(key, 3)
        w = jax.random.normal(k1, (out_channels, cin, 1, 1), jnp.float32)
        w = w / np.sqrt(cin)
        b = 0.01 * jax.random.normal(k2, (out_channels,), jnp.float32)
        torch_params["inner"].append((w, b))
        kernel_params["inner"].append(
            (w[:, :, 0, 0].T.astype(jnp.bfloat16), b.reshape(1, -1)))
    for _ in in_channels:
        key, k1, k2 = jax.random.split(key, 3)
        w = jax.random.normal(k1, (out_channels, out_channels, 3, 3), jnp.float32)
        w = w / np.sqrt(9 * out_channels)
        b = 0.01 * jax.random.normal(k2, (out_channels,), jnp.float32)
        torch_params["layer"].append((w, b))
        # OIHW -> (kh, kw, Cin, Cout) -> (3, 3*Cin, Cout); K index = kw*Cin + ci,
        # matching the kernel's kw-major channel concat.
        wk = jnp.transpose(w, (2, 3, 1, 0)).reshape(3, 3 * out_channels, out_channels)
        kernel_params["layer"].append((wk.astype(jnp.bfloat16), b.reshape(1, -1)))
    return torch_params, kernel_params


# ----------------------------------------------------------------------------
if __name__ == "__main__":
    # small stand-ins for (256, 512, 1024, 2048) -> 256; keep C lane-dense (128)
    in_channels = (32, 64, 128, 256)
    out_channels = 128
    batch = 2
    spatial = (32, 16, 8, 4)          # strides /4, /8, /16, /32 of a 128-px image

    key = jax.random.PRNGKey(0)
    key, pkey = jax.random.split(key)
    torch_params, kernel_params = make_params(pkey, in_channels, out_channels)

    x_dict = OrderedDict()
    for i, (cin, s) in enumerate(zip(in_channels, spatial)):
        key, k = jax.random.split(key)
        x_dict[i] = jax.random.normal(k, (batch, cin, s, s), jnp.float32)

    outputs = fpn_forward(x_dict, kernel_params, extra_blocks="pool")
    outputs = jax.tree_util.tree_map(jax.block_until_ready, outputs)

    # correctness check against a pure-JAX f32 reference (bf16 MXU path with f32
    # accumulation and bf16 intermediates -> tolerance relative to output scale)
    ref = fpn_ref(x_dict, torch_params, extra_blocks="pool")
    for k in list(range(len(in_channels))) + ["pool"]:
        got = np.asarray(outputs[k], dtype=np.float32)
        want = np.asarray(ref[k], dtype=np.float32)
        assert got.shape == want.shape, (k, got.shape, want.shape)
        scale = max(1.0, float(np.max(np.abs(want))))
        err = float(np.max(np.abs(got - want)))
        assert err <= 5e-2 * scale, (k, err, scale)

    print("KERNEL_OK")
</pallas_src>

<mosaic_0001>
module attributes {stable_mosaic.version = 11 : i64} {
  func.func @_lateral_kernel(%arg0: i32, %arg1: i32, %arg2: memref<1x4x4x256xbf16, #tpu.memory_space<vmem>>, %arg3: memref<256x128xbf16, #tpu.memory_space<vmem>>, %arg4: memref<1x128xf32, #tpu.memory_space<vmem>>, %arg5: memref<1x4x4x128xbf16, #tpu.memory_space<vmem>>) attributes {dimension_semantics = [#tpu.dimension_semantics<parallel>, #tpu.dimension_semantics<parallel>], iteration_bounds = array<i64: 2, 1>, scalar_prefetch = 0 : i64, scratch_operands = 0 : i64, tpu.core_type = #tpu.core_type<tc>, window_params = [{transform_indices = @transform_0, window_bounds = array<i64: 1, 4, 4, 256>}, {pipeline_mode = #tpu.pipeline_mode<synchronous>, transform_indices = @transform_1, window_bounds = array<i64: 256, 128>}, {pipeline_mode = #tpu.pipeline_mode<synchronous>, transform_indices = @transform_2, window_bounds = array<i64: 1, 128>}, {transform_indices = @transform_3, window_bounds = array<i64: 1, 4, 4, 128>}]} {
    %c0 = arith.constant 0 : index
    %c0_0 = arith.constant 0 : index
    %c0_1 = arith.constant 0 : index
    %c0_2 = arith.constant 0 : index
    %0 = vector.load %arg2[%c0, %c0_0, %c0_1, %c0_2] : memref<1x4x4x256xbf16, #tpu.memory_space<vmem>>, vector<1x4x4x256xbf16>
    %1 = vector.shape_cast %0 : vector<1x4x4x256xbf16> to vector<16x256xbf16>
    %c0_3 = arith.constant 0 : index
    %c0_4 = arith.constant 0 : index
    %2 = vector.load %arg3[%c0_3, %c0_4] : memref<256x128xbf16, #tpu.memory_space<vmem>>, vector<256x128xbf16>
    %cst = arith.constant dense<0.000000e+00> : vector<16x128xf32>
    %3 = tpu.matmul %1, %2, %cst {dimension_numbers = #tpu.dot_dimension_numbers<[1], [0], [0], [1], [0, 0, 1, 1], [], []>} : vector<16x256xbf16>, vector<256x128xbf16>, vector<16x128xf32> -> vector<16x128xf32>
    %c0_5 = arith.constant 0 : index
    %c0_6 = arith.constant 0 : index
    %4 = vector.load %arg4[%c0_5, %c0_6] : memref<1x128xf32, #tpu.memory_space<vmem>>, vector<1x128xf32>
    %5 = vector.broadcast %4 : vector<1x128xf32> to vector<16x128xf32>
    %6 = arith.addf %3, %5 : vector<16x128xf32>
    %7 = arith.truncf %6 : vector<16x128xf32> to vector<16x128xbf16>
    %8 = vector.shape_cast %7 : vector<16x128xbf16> to vector<1x4x4x128xbf16>
    %c0_7 = arith.constant 0 : index
    %c0_8 = arith.constant 0 : index
    %c0_9 = arith.constant 0 : index
    %c0_10 = arith.constant 0 : index
    %9 = vector.load %arg5[%c0_7, %c0_8, %c0_9, %c0_10] : memref<1x4x4x128xbf16, #tpu.memory_space<vmem>>, vector<1x4x4x128xbf16>
    tpu.vector_store %arg5[%c0_7, %c0_8, %c0_9, %c0_10], %8 {strides = array<i32>} : memref<1x4x4x128xbf16, #tpu.memory_space<vmem>>, vector<1x4x4x128xbf16>,
    return
  }
  func.func @transform_0(%arg0: i32, %arg1: i32) -> (i32, i32, i32, i32) {
    %c0_i32 = arith.constant 0 : i32
    %c0_i32_0 = arith.constant 0 : i32
    %c0_i32_1 = arith.constant 0 : i32
    return %arg0, %arg1, %c0_i32, %c0_i32_0 : i32, i32, i32, i32
  }
  func.func @transform_1(%arg0: i32, %arg1: i32) -> (i32, i32) {
    %c0_i32 = arith.constant 0 : i32
    %c0_i32_0 = arith.constant 0 : i32
    %c0_i32_1 = arith.constant 0 : i32
    return %c0_i32, %c0_i32_0 : i32, i32
  }
  func.func @transform_2(%arg0: i32, %arg1: i32) -> (i32, i32) {
    %c0_i32 = arith.constant 0 : i32
    %c0_i32_0 = arith.constant 0 : i32
    %c0_i32_1 = arith.constant 0 : i32
    return %c0_i32, %c0_i32_0 : i32, i32
  }
  func.func @transform_3(%arg0: i32, %arg1: i32) -> (i32, i32, i32, i32) {
    %c0_i32 = arith.constant 0 : i32
    %c0_i32_0 = arith.constant 0 : i32
    %c0_i32_1 = arith.constant 0 : i32
    return %arg0, %arg1, %c0_i32, %c0_i32_0 : i32, i32, i32, i32
  }
}

</mosaic_0001>

<bundles_post_ra>
// kernel: tpu_custom_call.1
= control target key start
LH: loop header
LB: loop body
LE: loop exit
PB: predicated region body
PF: predicated region fallthrough
CT: control target
= control target key end

     0   :  { %8 = vsyncpa [#allocation3], 0  ;;  %s1136_s0 = inlined_call_operand.hbm [shape: bf16[2,4,4,256], index: 0, kind: input, shape index: {}]   ;;  %s1137_s1 = inlined_call_operand.hbm [shape: bf16[256,128], index: 1, kind: input, shape index: {}]   ;;  %s1138_s2 = inlined_call_operand.vmem [shape: f32[1,128], index: 2, kind: input, shape index: {}]   ;;  %s1139_s3 = inlined_call_operand.hbm [shape: bf16[2,4,4,128], index: 3, kind: output, shape index: {}]  }
   0x1   :  { %10 = vsyncpa [#allocation3 + $0x1], 0 }
   0x2   :  { %11 = vsyncpa [#allocation6], 0 }
   0x3   :  { %12 = vsyncpa [#allocation4], 0 }
   0x4   :  { %14 = vsyncpa [#allocation4 + $0x1], 0  ;;  %s903_s12 = smov 0   ;;  %s905_s13 = smov 0  }
   0x5   :  { %s907_s14 = smov 0   ;;  %s909_s15 = smov 0  }
   0x6   :  { %s911_s16 = smov 0   ;;  %s913_s17 = smov 0  }
   0x7 LB: > { %s570_s18 = sadd.s32 4294967295, %s873_s17   ;;  %s571_s19 = sadd.s32 4294967294, %s873_s17   ;;  %s873_s17 = sphi %s913_s17, %s20_s17   ;;  %s869_s16 = sphi %s911_s16, %s1163_s16   ;;  %s865_s15 = sphi %s909_s15, %s1162_s15   ;;  %s861_s14 = sphi %s907_s14, %s1161_s14   ;;  %s857_s13 = sphi %s905_s13, %s1160_s13   ;;  %s853_s12 = sphi %s903_s12, %s1159_s12  }
   0x8   : > { %p54_p0 = scmp.ne.s32.totalorder %s857_s13, %s853_s12  ;;  %p937_p1 = scmp.eq.s32.totalorder %s570_s18, 0 }
   0x9   : > { %p941_p2 = scmp.eq.s32.totalorder %s570_s18, 1  ;;  %p128_p3 = scmp.eq.s32.totalorder %s571_s19, 1 }
   0xa   : > { %s1144_s20 = scalar_select %p937_p1, 1, 0 }
   0xb   : > { %s1145_s21 = scalar_select %p941_p2, 1, 0 }
   0xc   : > { %p947_p4 = por %p937_p1, %p54_p0  ;;  %p572_p5 = scmp.ge.s32.totalorder %s873_s17, 1 }
   0xd   : > { %p952_p6 = por %p128_p3, %p54_p0  ;;  %p135_p7 = scmp.lt.s32.totalorder %s873_s17, 3 }
   0xe   : > { %s1146_s22 = scalar_select %p947_p4, 1, 0 }
   0xf   : > { %s1147_s23 = scalar_select %p952_p6, 1, 0 }
  0x10   : > { %p957_p8 = pnand %p572_p5, %p135_p7  ;;  %s875_s25 = smov [#allocation5]  }
  0x11   : > { %s147_s26 = sshll.u32 %s875_s25, 4  ;;  %s32_s28 = sadd.s32 1, %s869_s16  ;;  %s148_s26 = int_to_ptr.vmem [resolvable:$true] %s147_s26 }
  0x12   : > { %s1148_s24 = scalar_select %p957_p8, 1, 0 }
  0x13   : > { %p639_p9 = pneg %p957_p8  ;;  %s729_s4 = scalar_lea.hbm %s1137_s1, 2048 }
  0x14   : > { %p730_p12 = scmp.ne.s32.totalorder %s1137_s1, %s729_s4  ;;  %p736_p5 = scmp.lt.u32.totalorder %s729_s4, %s1137_s1 }
  0x15   : > { %p966_p11 = pnand %p639_p9, %p937_p1 }
  0x17   : > { %p731_p13 = pneg %p966_p11 }
  0x19   : > { %p732_p0 = pnand %p731_p13, %p730_p12 }
  0x1b   : > { %p733_p3 = pneg %p732_p0 }
  0x1d   : > { %p738_p7 = pnand %p736_p5, %p733_p3 }
  0x1f   : > { %741 = shalt.err (!%p738_p7)
}
  0x20   : > { %s742_s9 = scalar_lea.vmem %s148_s26, 2048  ;;  %p750_p1 = scmp.lt.s32.totalorder %s148_s26, %s148_s26 }
  0x21   : > { %p743_p9 = scmp.ne.s32.totalorder %s148_s26, %s742_s9  ;;  %p751_p4 = scmp.lt.s32.totalorder %s742_s9, %s742_s9 }
  0x23   : > { %p745_p10 = pnand %p743_p9, %p731_p13  ;;  %p752_p8 = por %p751_p4, %p750_p1 }
  0x25   : > { %p746_p6 = pneg %p745_p10 }
  0x27   : > { %p753_p2 = pnand %p752_p8, %p746_p6 }
  0x29   : > { %756 = shalt.err (!%p753_p2)
}
  0x2a   : > { %s876_s10 = smov 64   ;;  %s877_s11 = smov 4  }
  0x2b   : > { %642 = dma.hbm_to_vmem [thread:$0]  (!%p966_p11), %s1137_s1, 2048, %s148_s26, [#allocation6], %s876_s10, %s876_s10, %s877_s11  }
  0x2c   : > { %p34_p1 = scmp.ge.s32.totalorder %s32_s28, 2  ;;  %s41_s25 = sadd.s32 1, %s861_s14 }
  0x2d   : > { %p48_p2 = scmp.ne.s32.totalorder %s861_s14, %s857_s13  ;;  %p49_p4 = scmp.eq.s32.totalorder %s873_s17, 0 }
  0x2e   : > { %s1165_s28 = smov (%p34_p1, %s32_s28), 0  ;;  %p1151_p8 = scmp.ne.s32.totalorder %s1145_s21, 0 }
  0x2f   : > { %p996_p6 = por %p49_p4, %p48_p2  ;;  %s36_s30 = ssub.s32 %s869_s16, %s1165_s28 }
  0x30   : > { %p1002_p10 = por %p1151_p8, %p48_p2  ;;  %p652_p12 = scmp.lt.s32.totalorder %s873_s17, 2 }
  0x31   : > { %p39_p11 = scmp.eq.s32.totalorder %s36_s30, 0  ;;  %s164_s26 = sand.u32 1, %s861_s14  }
  0x32   : > { %s575_s4 = sshll.u32 %s164_s26, 4  ;;  %s607_s6 = sshll.u32 %s869_s16, 8 }
  0x33   : > { %s1011_s5 = scalar_select %p39_p11, %s861_s14, %s41_s25  }
  0x34   : > { %s1017_s9 = scalar_lea.hbm %s1136_s0, %s607_s6  ;;  %s168_s21 = scalar_lea.vmem [#allocation2], %s575_s4 }
  0x35   : > { %s178_s18 = sshll.u32 %s168_s21, 4  ;;  %p1023_p13 = pnand %p652_p12, %p996_p6  ;;  %s1019_s18 = int_to_ptr.vmem [resolvable:$true] %s178_s18 }
  0x36   : > { %s1027_s25 = scalar_lea.sflag [#allocation3], %s164_s26  ;;  %s757_s30 = scalar_lea.hbm %s1017_s9, 256 }
  0x37   : > { %p758_p0 = scmp.ne.s32.totalorder %s1017_s9, %s757_s30  ;;  %p759_p3 = pneg %p1023_p13 }
  0x38   : > { %s762_s29 = scalar_lea.hbm %s1136_s0, 512  ;;  %p763_p9 = scmp.lt.u32.totalorder %s1017_s9, %s1136_s0 }
  0x39   : > { %p760_p5 = pnand %p759_p3, %p758_p0  ;;  %p764_p1 = scmp.lt.u32.totalorder %s762_s29, %s757_s30 }
  0x3a   : > { %p766_p4 = scmp.lt.u32.totalorder %s757_s30, %s1017_s9 }
  0x3b   : > { %p761_p7 = pneg %p760_p5  ;;  %p765_p2 = por %p764_p1, %p763_p9 }
  0x3d   : > { %p767_p6 = por %p766_p4, %p765_p2 }
  0x3f   : > { %p768_p8 = pnand %p767_p6, %p761_p7 }
  0x41   : > { %771 = shalt.err (!%p768_p8)
}
  0x42   : > { %s772_s26 = scalar_lea.vmem %s1019_s18, 256  ;;  %s878_s21 = smov [#allocation2]  }
  0x43   : > { %p773_p12 = scmp.ne.s32.totalorder %s1019_s18, %s772_s26  ;;  %s777_s4 = sshll.u32 %s878_s21, 4  ;;  %s778_s4 = int_to_ptr.vmem [resolvable:$false] %s777_s4 }
  0x44   : > { %s779_s6 = scalar_lea.vmem %s778_s4, 512  ;;  %p780_p5 = scmp.lt.s32.totalorder %s1019_s18, %s778_s4 }
  0x45   : > { %p775_p11 = pnand %p773_p12, %p759_p3  ;;  %p781_p9 = scmp.lt.s32.totalorder %s779_s6, %s772_s26 }
  0x47   : > { %p776_p0 = pneg %p775_p11  ;;  %p782_p1 = por %p781_p9, %p780_p5 }
  0x49   : > { %p783_p2 = pnand %p782_p1, %p776_p0 }
  0x4b   : > { %786 = shalt.err (!%p783_p2)
}
  0x4c   : > { %646 = dma.hbm_to_vmem [thread:$0]  (!%p1023_p13), %s1017_s9, 256, %s1019_s18, %s1027_s25, %s876_s10, %s876_s10, %s877_s11  }
  0x4d   : > { %p1154_p3 = scmp.ne.s32.totalorder %s1148_s24, 0 }
  0x4e   : > { %s1061_s30 = sand.u32 (!%p1154_p3), 1, %s857_s13   ;;  %p1155_p7 = scmp.ne.s32.totalorder (!%p1154_p3), %s1146_s22, 0 }
  0x4f   : > { %190 = sbr.rel (%p1154_p3) target bundleno = 363 (0x16b), region = 32  ;;  %s579_s29 = sshll.u32 (!%p1154_p3), %s1061_s30, 4 }
  0x50   : > { %s193_s7 = scalar_lea.sflag (!%p1154_p3), [#allocation3], %s1061_s30  ;;  %s1065_s8 = scalar_lea.vmem (!%p1154_p3), [#allocation2], %s579_s29 }
  0x56   : > { %840 = dma.done.wait (%p1155_p7), %s193_s7, 256  }
  0x57   : > { %842 = vsyncadd (%p1155_p7), %s193_s7, 4294967040  ;;  %p1156_p13 = scmp.ne.s32.totalorder %s1144_s20, 0 }
  0x59   : > { %844 = dma.done.wait (%p1156_p13), [#allocation6], 2048  }
  0x5a   : > { %846 = vsyncadd (%p1156_p13), [#allocation6], 4294965248  ;;  %v709_v0 = vld [vmem:[#allocation5 + $0x40] sm:$0xff]   ;;  %v711_v2 = vld [vmem:[#allocation5 + $0x48] sm:$0xff]   ;;  %v879_v6 = vmov 1983009808   ;;  %v278_v8 = vlaneseq }
  0x5b   : > { %v710_v1 = vld [vmem:[#allocation5] sm:$0xff]   ;;  %609 = vmatprep.subr.bf16.mxu0 %v709_v0  ;;  %v712_v3 = vld [vmem:[#allocation5 + $0x8] sm:$0xff]   ;;  %v713_v4 = vld [vmem:[#allocation5 + $0x50] sm:$0xff]   ;;  %v276_v7 = vunpack.c.l.s4 %v879_v6  ;;  %s581_s24 = sshll.u32 %s1061_s30, 3  ;;  %s608_s9 = sshll.u32 %s865_s15, 7 }
  0x5c   : > { %610 = vmatpush3.bf16.msra.mxu0 %v710_v1  ;;  %v714_v5 = vld [vmem:[#allocation5 + $0x10] sm:$0xff]   ;;  %v715_v9 = vld [vmem:[#allocation5 + $0x58] sm:$0xff]   ;;  %v279_v12 = vshrl.u32 %v278_v8, 7  ;;  %v717_v13 = vld [vmem:[#allocation5 + $0x60] sm:$0xff]   ;;  %s222_s10 = scalar_lea.vmem [#allocation7], %s581_s24  ;;  %s1087_s25 = scalar_lea.hbm %s1139_s3, %s608_s9 }
  0x5d   : > { %611 = vmatprep.subr.bf16.mxu0 %v711_v2  ;;  %v716_v10 = vld [vmem:[#allocation5 + $0x18] sm:$0xff]   ;;  %v277_v11 = vunpack.c.0.s8 %v276_v7  ;;  %v718_v14 = vld [vmem:[#allocation5 + $0x20] sm:$0xff]   ;;  %v719_v15 = vld [vmem:[#allocation5 + $0x68] sm:$0xff]   ;;  %s473_s11 = sshll.u32 %s222_s10, 4  ;;  %s458_s26 = scalar_lea.sflag [#allocation4], %s1061_s30  ;;  %s1082_s11 = int_to_ptr.vmem [resolvable:$true] %s473_s11 }
  0x5e   : > { %v727_v17 = vld.sshfl [vmem:[%s1065_s8] sm:$0xff pattern:$0x76325410]  ;;  %v728_v18 = vld.sshfl [vmem:[%s1065_s8 + $0x8] sm:$0xff pattern:$0x76325410] }
  0x5f   : > { %v280_v16 = vsub.s32 %v277_v11, %v279_v12  ;;  %v720_v19 = vld [vmem:[#allocation5 + $0x28] sm:$0xff]   ;;  %v721_v20 = vld [vmem:[#allocation5 + $0x70] sm:$0xff]   ;;  %v290_v21 = vcombine.high %v727_v17, %v728_v18  ;;  %v723_v23 = vld [vmem:[#allocation5 + $0x78] sm:$0xff]   ;;  %v289_v25 = vcombine.low %v727_v17, %v728_v18  ;;  %s787_s15 = scalar_lea.vmem %s1082_s11, 128  ;;  %s880_s21 = smov [#allocation7]  }
  0x60   : > { %612 = vmatpush3.bf16.msra.mxu0 %v712_v3  ;;  %v722_v22 = vld [vmem:[#allocation5 + $0x30] sm:$0xff]   ;;  %v724_v24 = vld [vmem:[#allocation5 + $0x38] sm:$0xff]   ;;  %v582_v30 = vld [vmem:[%s1138_s2] ss:$0 sm:$0xff]  ;;  %p788_p4 = scmp.ne.s32.totalorder %s1082_s11, %s787_s15  ;;  %s791_s4 = sshll.u32 %s880_s21, 4  ;;  %s792_s4 = int_to_ptr.vmem [resolvable:$false] %s791_s4 }
  0x61   : > { %613 = vmatprep.subr.bf16.mxu0 %v713_v4  ;;  %421 = vmatprep.mubr.bf16.mxu0 %v290_v21  ;;  %s793_s6 = scalar_lea.vmem %s792_s4, 256  ;;  %p794_p12 = scmp.lt.s32.totalorder %s1082_s11, %s792_s4 }
  0x62   : > { %p789_p6 = pnand %p788_p4, %p1002_p10  ;;  %p795_p11 = scmp.lt.s32.totalorder %s793_s6, %s787_s15 }
  0x64   : > { %614 = vmatpush3.bf16.msra.mxu0 %v714_v5  ;;  %p790_p8 = pneg %p789_p6  ;;  %p796_p0 = por %p795_p11, %p794_p12 }
  0x65   : > { %615 = vmatprep.subr.bf16.mxu0 %v715_v9 }
  0x66   : > { %p797_p5 = pnand %p796_p0, %p790_p8 }
  0x68   : > { %616 = vmatpush3.bf16.msra.mxu0 %v716_v10 }
  0x69   : > { %617 = vmatprep.subr.bf16.mxu0 %v717_v13 }
  0x6c   : > { %618 = vmatpush3.bf16.msra.mxu0 %v718_v14 }
  0x6d   : > { %619 = vmatprep.subr.bf16.mxu0 %v719_v15 }
  0x70   : > { %620 = vmatpush3.bf16.msra.mxu0 %v720_v19 }
  0x71   : > { %621 = vmatprep.subr.bf16.mxu0 %v721_v20 }
  0x74   : > { %622 = vmatpush3.bf16.msra.mxu0 %v722_v22 }
  0x75   : > { %623 = vmatprep.subr.bf16.mxu0 %v723_v23 }
  0x78   : > { %624 = vmatpush3.bf16.msra.mxu0 %v724_v24 }
  0x7b   : > { %422 = vmatmul.mubr.bf16.vlgmr.msra.gmra.mrb[0].mxu0 %v289_v25 }
 0x14e   : > { %v625_v26 = vpop.f32.mrb[0].mxu0 }
 0x14f   : > { %v626_v27 = vpop.f32.mrb[1].mxu0 }
 0x150   : > { %v627_v28 = vadd.f32 %v626_v27, %v625_v26  ;;  %v628_v29 = vpop.f32.mrb[2].mxu0 }
 0x151   : > { %v629_v31 = vpop.f32.mrb[3].mxu0 }
 0x152   : > { %v630_v32 = vadd.f32 %v629_v31, %v628_v29  ;;  %v424_v33 = vadd.f32 %v627_v28, %v582_v30 }
 0x154   : > { %v427_v34 = vadd.f32 %v630_v32, %v582_v30 }
 0x156   : > { %v430_v35 = vpack.c.bf16 %v427_v34, %v424_v33  ;;  %v599_v36 = vpack.c.bf16 %v427_v34, %v427_v34 }
 0x158   : > { %v439_v37 = vrot.slane %v430_v35, %v280_v16  ;;  %v446_v38 = vrot.slane %v599_v36, %v280_v16  ;;  %600 = vst.sshfl [vmem:[%s222_s10] sm:$0x3 pattern:$0x76325410] %v430_v35 }
 0x159   : > { %601 = vst.sshfl [vmem:[%s222_s10 + $0x4] sm:$0x3 pattern:$0x76325410] %v599_v36 }
 0x15a   : > { %v447_v39 = vcombine.high %v439_v37, %v439_v37  ;;  %v448_v40 = vcombine.high %v446_v38, %v446_v38 }
 0x15c   : > { %454 = vst [vmem:[%s222_s10 + $0x2] sm:$0x3] %v447_v39  ;;  %456 = vst [vmem:[%s222_s10 + $0x6] sm:$0x3] %v448_v40 }
 0x15d   : > { %800 = shalt.err (!%p797_p5)
}
 0x15e   : > { %s801_s29 = scalar_lea.hbm %s1087_s25, 128  ;;  %s805_s20 = scalar_lea.hbm %s1139_s3, 256 }
 0x15f   : > { %p802_p9 = scmp.ne.s32.totalorder %s1087_s25, %s801_s29  ;;  %p806_p3 = scmp.lt.u32.totalorder %s1087_s25, %s1139_s3 }
 0x160   : > { %p807_p7 = scmp.lt.u32.totalorder %s805_s20, %s801_s29  ;;  %p809_p4 = scmp.lt.u32.totalorder %s801_s29, %s1087_s25 }
 0x161   : > { %p803_p1 = pnand %p802_p9, %p1002_p10 }
 0x162   : > { %p808_p13 = por %p807_p7, %p806_p3 }
 0x163   : > { %p804_p2 = pneg %p803_p1 }
 0x164   : > { %p810_p6 = por %p809_p4, %p808_p13 }
 0x166   : > { %p811_p8 = pnand %p810_p6, %p804_p2 }
 0x168   : > { %814 = shalt.err (!%p811_p8)
}
 0x169   : > { %s881_s10 = smov 32   ;;  %s882_s9 = smov 2  }
 0x16a   : > { %637 = dma.vmem_to_hbm [thread:$0]  (%p1002_p10), %s1082_s11, 128, %s1087_s25, %s458_s26, %s881_s10, %s881_s10, %s882_s9  }
 0x16b PF: > { %s488_s18 = sand.u32 1, %s853_s12   ;;  %p1157_p12 = scmp.ne.s32.totalorder %s1147_s23, 0 }
 0x16c   : > { %p1158_p11 = scmp.ge.s32.totalorder %s873_s17, 2  ;;  %s489_s19 = scalar_lea.sflag [#allocation4], %s488_s18 }
 0x16e   : > { %p648_p0 = pnand %p1158_p11, %p1157_p12 }
 0x170   : > { %848 = dma.done.wait (!%p648_p0), %s489_s19, 128  }
 0x171   : > { %850 = vsyncadd (!%p648_p0), %s489_s19, 4294967168  ;;  %s20_s17 = sadd.s32 1, %s873_s17   ;;  %s1159_s12 = smov %s857_s13 }
 0x172   : > { %p17_p5 = scmp.ge.s32.totalorder %s20_s17, 4   ;;  %s1160_s13 = smov %s861_s14 }
 0x173   : > { %s1161_s14 = smov %s1011_s5  ;;  %s1162_s15 = smov %s869_s16 }
 0x174   : > { %s1163_s16 = smov %s1165_s28  ;;  %19 = sbr.rel (!%p17_p5) target bundleno = 7 (0x7), region = 81 }
 0x17b   :  { %494 = vsyncpa [#allocation3], 1 }
 0x17c   :  { %496 = vsyncpa [#allocation3 + $0x1], 1 }
 0x17d   :  { %497 = vsyncpa [#allocation6], 1 }
 0x17e   :  { %498 = vsyncpa [#allocation4], 1 }
 0x17f   :  { %500 = vsyncpa [#allocation4 + $0x1], 1 }

</bundles_post_ra>
